<compile_context>
chip_gen: v6e
topology: v6e:2x2x1
jax: 0.10.0
libtpu: 0.0.40
codegen_flags: <defaults>
</compile_context>

<pallas_src>
import math

import jax
import jax.numpy as jnp
from jax import lax
from jax.experimental import pallas as pl
from jax.experimental.pallas import tpu as pltpu


def _phys_vmem_bytes() -> int:
    """Physical VMEM per TensorCore; conservative default if the query fails."""
    try:
        info = pltpu.get_tpu_info()
        v = getattr(info, "vmem_capacity_bytes", None)
        if v:
            return int(v)
    except Exception:
        pass
    return 64 << 20  # v7x-sized budget: safe on every generation


def _sublane_tile(itemsize: int) -> int:
    # Native sublane tile: f32 -> 8, bf16 -> 16, int8/fp8 -> 32.
    return max(8, 32 // max(1, itemsize))


def _divisors(n: int):
    out = set()
    i = 1
    while i * i <= n:
        if n % i == 0:
            out.add(i)
            out.add(n // i)
        i += 1
    return sorted(out)


def _pick_block_rows(rows, row_bytes, sublane, cap_bytes, target_bytes):
    """Largest legal row-block (divisor of `rows`, multiple of 8 or the whole
    thing, <= cap) that stays under `target_bytes`; the smallest legal one if
    even that exceeds the target.  None if nothing fits the VMEM cap."""
    legal = [d for d in _divisors(rows)
             if (d % 8 == 0 or d == rows) and d * row_bytes <= cap_bytes]
    if not legal:
        return None
    native = [d for d in legal if d % sublane == 0 or d == rows]
    pool = native or legal
    under = [d for d in pool if d * row_bytes <= target_bytes]
    return max(under) if under else min(pool)


def _choose_layout(batch, patches, d_model, itemsize, sublane, cap_bytes,
                   target_bytes):
    """Factor B*P*D into (rows, lane, block_rows).

    Preferred: lane = lcm(D, 128) (grown while rows stays tile-aligned) so the
    flattened output is lane-dense.  Fallbacks use a full trailing dim as the
    lane (always a legal block dim) so awkward shapes degrade to smaller
    blocks instead of one whole-output block."""
    total = batch * patches * d_model
    base = d_model * 128 // math.gcd(d_model, 128)  # lcm(D, 128)

    candidates = []
    if total % base == 0:
        lane = base
        while (lane * 2 <= 4096 and total % (lane * 2) == 0
               and (total // (lane * 2)) % sublane == 0):
            lane *= 2
        candidates.append((total // lane, lane))
    candidates.append((batch * patches, d_model))     # (B*P, D) view
    candidates.append((batch, patches * d_model))     # (B, P*D) view

    for rows, lane in candidates:
        block_rows = _pick_block_rows(rows, lane * itemsize, sublane,
                                      cap_bytes, target_bytes)
        if block_rows is not None:
            return rows, lane, block_rows
    # Pathological shapes only: single whole-output block.
    return batch, patches * d_model, batch


def _build_kernel(per_split: int, ring: int):
    """Kernel: build the broadcast slab once, then stream it to `per_split`
    consecutive HBM blocks with up to `ring` write DMAs in flight."""

    def kernel(idx_ref, embed_ref, out_ref, slab_ref, sem_ref):
        # idx_ref:   SMEM (1,) int32         -- scalar-prefetched scale index
        # embed_ref: VMEM (max_scales, D)    -- full (tiny) table, DMA'd once
        # out_ref:   HBM  (rows, lane)       -- raw output ref (pl.ANY)
        # slab_ref:  VMEM (block_rows, lane) -- broadcast slab, built once
        # sem_ref:   DMA semaphores (ring,)
        max_scales, d_model = embed_ref.shape
        block_rows, lane = slab_ref.shape
        reps = lane // d_model

        # Clamp: nn.Embedding raises on OOB; TPU VMEM reads are unchecked, so
        # keep the gather well defined instead.
        idx = jnp.clip(idx_ref[0], 0, max_scales - 1)
        row = embed_ref[pl.ds(idx, 1), :]                    # (1, D) row gather
        # One-time fill (per grid step == per core); hidden behind the DMAs.
        slab_ref[...] = jnp.tile(row, (block_rows, reps))

        first = pl.program_id(0) * per_split                 # this core's blocks

        def issue(j, carry):
            slot = j % ring

            # Wait before a semaphore slot is reused.
            @pl.when(j >= ring)
            def _():
                pltpu.make_async_copy(
                    slab_ref, out_ref.at[pl.ds(0, block_rows), :],
                    sem_ref.at[slot]).wait()

            start = pl.multiple_of((first + j) * block_rows, block_rows)
            pltpu.make_async_copy(
                slab_ref, out_ref.at[pl.ds(start, block_rows), :],
                sem_ref.at[slot]).start()
            return carry

        lax.fori_loop(0, per_split, issue, 0, unroll=per_split <= 8)

        # Drain: exactly one outstanding copy per used semaphore slot remains.
        for s in range(min(per_split, ring)):
            pltpu.make_async_copy(
                slab_ref, out_ref.at[pl.ds(0, block_rows), :],
                sem_ref.at[s]).wait()

    return kernel


def scale_encoding(embed_table: jax.Array,
                   batch_size: int,
                   num_patches: int,
                   scale_idx,
                   *,
                   target_block_bytes=None,
                   force_pallas: bool = False,
                   min_pallas_bytes: int = 1 << 20) -> jax.Array:
    """Pallas equivalent of ScaleEncoding.forward(batch_size, num_patches, scale_idx)."""
    max_scales, d_model = embed_table.shape
    dtype = embed_table.dtype
    itemsize = jnp.dtype(dtype).itemsize
    total = batch_size * num_patches * d_model
    total_bytes = total * itemsize

    idx = jnp.asarray(scale_idx, dtype=jnp.int32).reshape((1,))

    # Sub-block workloads: a kernel launch + DMA setup costs more than the
    # copy itself; let XLA broadcast (and ideally fuse into the consumer).
    if not force_pallas and total_bytes < min_pallas_bytes:
        row = jnp.take(embed_table, jnp.clip(idx[0], 0, max_scales - 1), axis=0)
        return jnp.broadcast_to(row[None, None, :],
                                (batch_size, num_patches, d_model))

    phys_vmem = _phys_vmem_bytes()
    sublane = _sublane_tile(itemsize)
    cap_bytes = min(16 << 20, phys_vmem // 4)            # hard per-block cap
    if target_block_bytes is None:
        # 16 MiB blocks on big-VMEM chips (v5e/v6e), 8 MiB on v7x.
        target_block_bytes = (16 << 20) if phys_vmem >= (100 << 20) else (8 << 20)
    target_block_bytes = min(target_block_bytes, cap_bytes)

    rows, lane, block_rows = _choose_layout(
        batch_size, num_patches, d_model, itemsize, sublane,
        cap_bytes, target_block_bytes)
    nblocks = rows // block_rows

    # Two grid steps ("parallel") when the work splits evenly into >=4 blocks
    # per TensorCore so both v7x cores stream their own half; on single-core
    # chips the extra step runs sequentially (cheap, idempotent slab refill).
    nsplits = 2 if (nblocks >= 8 and nblocks % 2 == 0) else 1
    per_split = nblocks // nsplits
    ring = max(1, min(4, per_split))                     # in-flight write DMAs

    slab_bytes = block_rows * lane * itemsize
    table_bytes = max_scales * d_model * itemsize
    vmem_limit = max(32 << 20, 2 * slab_bytes + 2 * table_bytes + (8 << 20))
    vmem_limit = min(vmem_limit, (phys_vmem * 3) // 4)

    grid_spec = pltpu.PrefetchScalarGridSpec(
        num_scalar_prefetch=1,
        grid=(nsplits,),
        in_specs=[
            # Whole (tiny) table resident in VMEM; constant block index =>
            # Pallas DMAs it only once across the grid.
            pl.BlockSpec((max_scales, d_model), lambda g, idx_ref: (0, 0)),
        ],
        # Raw HBM ref: output blocks are written with manual async copies, so
        # there is no per-step VMEM fill and no output double-buffer.
        out_specs=pl.BlockSpec(memory_space=pl.ANY),
        scratch_shapes=[
            pltpu.VMEM((block_rows, lane), dtype),       # broadcast slab
            pltpu.SemaphoreType.DMA((ring,)),            # write-DMA ring
        ],
    )

    cost = pl.CostEstimate(flops=0, transcendentals=0,
                           bytes_accessed=total_bytes + table_bytes)

    out_flat = pl.pallas_call(
        _build_kernel(per_split, ring),
        out_shape=jax.ShapeDtypeStruct((rows, lane), dtype),
        grid_spec=grid_spec,
        compiler_params=pltpu.CompilerParams(
            dimension_semantics=("parallel",),
            vmem_limit_bytes=int(vmem_limit),
            has_side_effects=True),
        cost_estimate=cost,
    )(idx, embed_table)

    # Row-major reshape back to (B, P, D): free, no data movement.
    return out_flat.reshape(batch_size, num_patches, d_model)


if __name__ == "__main__":
    max_scales = 10
    key = jax.random.PRNGKey(0)

    cases = [
        # (batch, patches, d_model, dtype, scale_idx, extra kwargs)
        (2, 8, 32, jnp.float32, 3, {}),                      # tiny: single block
        (8, 1024, 64, jnp.float32, 7,                        # multi-block: 2-way grid
         dict(target_block_bytes=64 << 10)),                 # split + DMA ring reuse
        (2, 512, 128, jnp.bfloat16, 9, {}),                  # packed-dtype tiling
    ]

    for i, (b, p, d, dt, sidx, kw) in enumerate(cases):
        k = jax.random.fold_in(key, i)
        table = jax.random.normal(k, (max_scales, d), dtype=jnp.float32).astype(dt)
        out = scale_encoding(table, b, p, sidx, force_pallas=True, **kw)
        out = jax.block_until_ready(out)
        ref = jnp.broadcast_to(table[sidx][None, None, :], (b, p, d))
        assert out.shape == (b, p, d), f"bad shape for case {i}: {out.shape}"
        assert out.dtype == table.dtype, f"bad dtype for case {i}: {out.dtype}"
        assert jnp.allclose(out.astype(jnp.float32), ref.astype(jnp.float32)), (
            f"mismatch vs reference for case {i}")

    # Small-output bypass path (plain XLA broadcast, no Pallas launch).
    table = jax.random.normal(key, (max_scales, 32), dtype=jnp.float32)
    out = jax.block_until_ready(scale_encoding(table, 2, 8, 3))
    ref = jnp.broadcast_to(table[3][None, None, :], (2, 8, 32))
    assert jnp.allclose(out, ref), "mismatch vs reference on bypass path"

    print("KERNEL_OK")
</pallas_src>

<mosaic_0001>
module attributes {stable_mosaic.version = 11 : i64} {
  func.func @kernel(%arg0: i32, %arg1: memref<1xi32, #tpu.memory_space<smem>>, %arg2: memref<10x32xf32, #tpu.memory_space<vmem>>, %arg3: memref<4x128xf32, #tpu.memory_space<any>>, %arg4: memref<4x128xf32, #tpu.memory_space<vmem>>, %arg5: memref<1x!tpu.dma_semaphore, #tpu.memory_space<semaphore_mem>>) attributes {dimension_semantics = [#tpu.dimension_semantics<parallel>], iteration_bounds = array<i64: 1>, scalar_prefetch = 1 : i64, scratch_operands = 2 : i64, tpu.core_type = #tpu.core_type<tc>, window_params = [{pipeline_mode = #tpu.pipeline_mode<synchronous>, transform_indices = @transform_0, window_bounds = array<i64: 10, 32>}, {}]} {
    %c0 = arith.constant 0 : index
    %0 = memref.load %arg1[%c0] : memref<1xi32, #tpu.memory_space<smem>>
    %c0_i32 = arith.constant 0 : i32
    %c9_i32 = arith.constant 9 : i32
    %1 = arith.maxsi %c0_i32, %0 : i32
    %2 = arith.minsi %c9_i32, %1 : i32
    %3 = arith.index_cast %2 : i32 to index
    %c0_0 = arith.constant 0 : index
    %4 = vector.load %arg2[%3, %c0_0] : memref<10x32xf32, #tpu.memory_space<vmem>>, vector<1x32xf32>
    %5 = tpu.concatenate %4, %4, %4, %4 in 0 : vector<1x32xf32>, vector<1x32xf32>, vector<1x32xf32>, vector<1x32xf32> -> vector<4x32xf32>
    %6 = tpu.concatenate %5, %5, %5, %5 in 1 : vector<4x32xf32>, vector<4x32xf32>, vector<4x32xf32>, vector<4x32xf32> -> vector<4x128xf32>
    %c0_1 = arith.constant 0 : index
    %c0_2 = arith.constant 0 : index
    %7 = vector.load %arg4[%c0_1, %c0_2] : memref<4x128xf32, #tpu.memory_space<vmem>>, vector<4x128xf32>
    tpu.vector_store %arg4[%c0_1, %c0_2], %6 {strides = array<i32>} : memref<4x128xf32, #tpu.memory_space<vmem>>, vector<4x128xf32>,
    %c1_i32 = arith.constant 1 : i32
    %8 = arith.muli %arg0, %c1_i32 : i32
    %c0_i32_3 = arith.constant 0 : i32
    %c1_i32_4 = arith.constant 1 : i32
    %c0_i32_5 = arith.constant 0 : i32
    %9 = arith.cmpi eq, %c1_i32_4, %c0_i32_5 : i32
    %c1_i32_6 = arith.constant 1 : i32
    %10 = arith.select %9, %c1_i32_6, %c1_i32_4 : i32
    %11 = arith.remsi %c0_i32_3, %10 : i32
    %c0_i32_7 = arith.constant 0 : i32
    %12 = arith.cmpi ne, %11, %c0_i32_7 : i32
    %c0_i32_8 = arith.constant 0 : i32
    %13 = arith.cmpi slt, %11, %c0_i32_8 : i32
    %c0_i32_9 = arith.constant 0 : i32
    %14 = arith.cmpi slt, %10, %c0_i32_9 : i32
    %15 = arith.xori %13, %14 : i1
    %16 = arith.andi %15, %12 : i1
    %17 = arith.addi %11, %10 : i32
    %18 = arith.select %16, %17, %11 : i32
    %c1_i32_10 = arith.constant 1 : i32
    %19 = arith.cmpi sge, %c0_i32_3, %c1_i32_10 : i32
    %20 = arith.extui %19 : i1 to i32
    %c0_i32_11 = arith.constant 0 : i32
    %21 = arith.cmpi ne, %20, %c0_i32_11 : i32
    scf.if %21 {
      %c0_i32_17 = arith.constant 0 : i32
      %c0_i32_18 = arith.constant 0 : i32
      %31 = tpu.memref_slice %arg3[%c0_i32_17, %c0_i32_18] : memref<4x128xf32, #tpu.memory_space<any>> -> memref<4x128xf32, #tpu.memory_space<any>>
      %32 = tpu.memref_slice %arg5[%18] : memref<1x!tpu.dma_semaphore, #tpu.memory_space<semaphore_mem>> -> memref<1x!tpu.dma_semaphore, #tpu.memory_space<semaphore_mem>>
      %33 = tpu.memref_squeeze %32 : memref<1x!tpu.dma_semaphore, #tpu.memory_space<semaphore_mem>> -> memref<!tpu.dma_semaphore, #tpu.memory_space<semaphore_mem>>
      tpu.wait_dma2 semaphore(%33 : memref<!tpu.dma_semaphore, #tpu.memory_space<semaphore_mem>>) src(%arg4 : memref<4x128xf32, #tpu.memory_space<vmem>>) dst(%31 : memref<4x128xf32, #tpu.memory_space<any>>)
    } else {
    }
    %22 = arith.addi %8, %c0_i32_3 : i32
    %c4_i32 = arith.constant 4 : i32
    %23 = arith.muli %22, %c4_i32 : i32
    %24 = tpu.assume_multiple %23, 4 : i32
    %c0_i32_12 = arith.constant 0 : i32
    %25 = tpu.memref_slice %arg3[%24, %c0_i32_12] : memref<4x128xf32, #tpu.memory_space<any>> -> memref<4x128xf32, #tpu.memory_space<any>>
    %26 = tpu.memref_slice %arg5[%18] : memref<1x!tpu.dma_semaphore, #tpu.memory_space<semaphore_mem>> -> memref<1x!tpu.dma_semaphore, #tpu.memory_space<semaphore_mem>>
    %27 = tpu.memref_squeeze %26 : memref<1x!tpu.dma_semaphore, #tpu.memory_space<semaphore_mem>> -> memref<!tpu.dma_semaphore, #tpu.memory_space<semaphore_mem>>
    tpu.enqueue_dma source(%arg4 : memref<4x128xf32, #tpu.memory_space<vmem>>) target(%25 : memref<4x128xf32, #tpu.memory_space<any>>) target_semaphore(%27 : memref<!tpu.dma_semaphore, #tpu.memory_space<semaphore_mem>>)
    %c1_i32_13 = arith.constant 1 : i32
    %c0_i32_14 = arith.constant 0 : i32
    %c0_i32_15 = arith.constant 0 : i32
    %c0_i32_16 = arith.constant 0 : i32
    %28 = tpu.memref_slice %arg3[%c0_i32_15, %c0_i32_16] : memref<4x128xf32, #tpu.memory_space<any>> -> memref<4x128xf32, #tpu.memory_space<any>>
    %29 = tpu.memref_slice %arg5[%c0_i32_14] : memref<1x!tpu.dma_semaphore, #tpu.memory_space<semaphore_mem>> -> memref<1x!tpu.dma_semaphore, #tpu.memory_space<semaphore_mem>>
    %30 = tpu.memref_squeeze %29 : memref<1x!tpu.dma_semaphore, #tpu.memory_space<semaphore_mem>> -> memref<!tpu.dma_semaphore, #tpu.memory_space<semaphore_mem>>
    tpu.wait_dma2 semaphore(%30 : memref<!tpu.dma_semaphore, #tpu.memory_space<semaphore_mem>>) src(%arg4 : memref<4x128xf32, #tpu.memory_space<vmem>>) dst(%28 : memref<4x128xf32, #tpu.memory_space<any>>)
    return
  }
  func.func @transform_0(%arg0: i32, %arg1: memref<1xi32, #tpu.memory_space<smem>>) -> (i32, i32) {
    %c0_i32 = arith.constant 0 : i32
    %c0_i32_0 = arith.constant 0 : i32
    %c0_i32_1 = arith.constant 0 : i32
    return %c0_i32, %c0_i32_0 : i32, i32
  }
}

</mosaic_0001>

<bundles_post_ra>
// kernel: tpu_custom_call.1
= control target key start
LH: loop header
LB: loop body
LE: loop exit
PB: predicated region body
PF: predicated region fallthrough
CT: control target
= control target key end

     0   :  { %8 = vsyncpa [#allocation7], 0  ;;  %s145_s9 = smov [#allocation6]   ;;  %s182_s0 = inlined_call_operand.<no memory space> [shape: s32[1], index: 0, kind: input, shape index: {}]   ;;  %s183_s1 = inlined_call_operand.hbm [shape: f32[10,32], index: 1, kind: input, shape index: {}]   ;;  %s184_s2 = inlined_call_operand.hbm [shape: f32[4,128], index: 2, kind: output, shape index: {}]  }
   0x1   :  { %s14_s10 = sshll.u32 %s145_s9, 4  ;;  %s15_s10 = int_to_ptr.vmem [resolvable:$true] %s14_s10 }
   0x2   :  { %s109_s11 = scalar_lea.vmem %s15_s10, 256  ;;  %p114_p1 = scmp.lt.s32.totalorder %s15_s10, %s15_s10 }
   0x3   :  { %p110_p0 = scmp.ne.s32.totalorder %s15_s10, %s109_s11  ;;  %p115_p2 = scmp.lt.s32.totalorder %s109_s11, %s109_s11 }
   0x5   :  { %p116_p3 = por %p115_p2, %p114_p1 }
   0x7   :  { %p117_p4 = pnand %p116_p3, %p110_p0 }
   0x9   :  { %120 = shalt.err (!%p117_p4)
}
   0xa   :  { %s146_s12 = smov 128   ;;  %s147_s13 = smov 8  }
   0xb   :  { %20 = dma.hbm_to_vmem [thread:$0]  %s183_s1, 256, %s15_s10, [#allocation7], %s146_s12, %s146_s12, %s147_s13  }
   0xc   :  { %141 = dma.done.wait [#allocation7], 256  }
   0xd   :  { %142 = vsyncadd [#allocation7], 4294967040  ;;  %p25_p5 = scmp.gt.s32.totalorder %s182_s0, 0  ;;  %p86_p6 = scmp.lt.s32.totalorder %s182_s0, 9  ;;  %vm38_vm0 = vcmask 1040384   ;;  %vm40_vm1 = vcmask 1041408  }
   0xe   :  { %vm42_vm2 = vcmask 1042432   ;;  %s148_s1 = smov 32   ;;  %s149_s23 = smov 96   ;;  %vm54_vm3 = vcmask 261120   ;;  %vm56_vm4 = vcmask 523264   ;;  %vm58_vm5 = vcmask 785408  }
   0xf   :  { %s186_s0 = smov (!%p25_p5, %s182_s0), 0  ;;  %s150_s24 = smov 64  }
  0x10   :  { %s188_s0 = smov (!%p86_p6, %s186_s0), 9 }
  0x11   :  { %s29_s22 = scalar_lea.vmem [#allocation6], %s188_s0  ;;  %s151_s0 = smov [#allocation2]  }
  0x12   :  { %v30_v0 = vld [vmem:[%s29_s22] sm:$0x1]  ;;  %s71_s25 = sshll.u32 %s151_s0, 4  ;;  %s72_s25 = int_to_ptr.vmem [resolvable:$true] %s71_s25 }
  0x13   :  { %v32_v1 = vrot.slane %v30_v0, 7  ;;  %v34_v2 = vrot.slane %v30_v0, 6  ;;  %v36_v3 = vrot.slane %v30_v0, 5  ;;  %s121_s26 = scalar_lea.vmem %s72_s25, 64  ;;  %p126_p8 = scmp.lt.s32.totalorder %s72_s25, %s72_s25 }
  0x14   :  { %p122_p7 = scmp.ne.s32.totalorder %s72_s25, %s121_s26  ;;  %p127_p9 = scmp.lt.s32.totalorder %s121_s26, %s121_s26 }
  0x15   :  { %v39_v4 = vsel %vm38_vm0, %v30_v0, %v32_v1 }
  0x16   :  { %v41_v5 = vsel %vm40_vm1, %v39_v4, %v34_v2  ;;  %p128_p10 = por %p127_p9, %p126_p8 }
  0x17   :  { %v43_v6 = vsel %vm42_vm2, %v41_v5, %v36_v3 }
  0x18   :  { %45 = vrot.lane.b32.xlu0 %v43_v6, %s148_s1  ;;  %51 = vrot.lane.b32.xlu1 %v43_v6, %s149_s23  ;;  %p129_p11 = pnand %p128_p10, %p122_p7 }
  0x1c   :  { %48 = vrot.lane.b32.xlu0 %v43_v6, %s150_s24 }
  0x8a   :  { %v46_v7 = vpop.permute.xlu0 %45  ;;  %v52_v8 = vpop.permute.xlu1 %51 }
  0x8b   :  { %v55_v9 = vsel %vm54_vm3, %v43_v6, %v46_v7 }
  0x8e   :  { %v49_v10 = vpop.permute.xlu0 %48 }
  0x8f   :  { %v57_v11 = vsel %vm56_vm4, %v55_v9, %v49_v10 }
  0x90   :  { %v59_v12 = vsel %vm58_vm5, %v57_v11, %v52_v8 }
  0x91   :  { %60 = vst [vmem:[#allocation2] sm:$0xf] %v59_v12 }
  0x92   :  { %132 = shalt.err (!%p129_p11)  }
  0x93   :  { %74 = dma.vmem_to_hbm [thread:$0]  %s72_s25, 64, %s184_s2, [#allocation3] }
  0x94   :  { %143 = dma.done.wait [#allocation3], 64 }
  0x95   :  { %144 = vsyncadd [#allocation3], 4294967232 }
  0x96   :  { %78 = vsyncpa [#allocation7], 1 }
  0x97   :  { %79 = vsyncmov [#allocation3] }
  0x9a   :  { %s80_s29 = vpop.sfrf %79 }
  0x9b   :  { %p91_p12 = scmp.ne.s32.totalorder %s80_s29, 0 }
  0x9d   :  { %84 = shalt.err (%p91_p12)  }

</bundles_post_ra>
